<compile_context>
chip_gen: v7x
topology: tpu7x:2x2x1
jax: 0.10.0
libtpu: 0.0.40
codegen_flags: <defaults>
</compile_context>

<pallas_src>
import functools

import jax
import jax.numpy as jnp
import numpy as np
from jax.experimental import pallas as pl
from jax.experimental.pallas import tpu as pltpu


# ---------------------------------------------------------------------------
# Pallas kernel 1: tiled matmul with fused bias (+ optional ReLU)
# ---------------------------------------------------------------------------
def _matmul_kernel(a_ref, b_ref, bias_ref, o_ref, acc_ref, *, relu):
    @pl.when(pl.program_id(2) == 0)
    def _():
        acc_ref[...] = jnp.zeros_like(acc_ref)

    acc_ref[...] += jnp.dot(a_ref[...], b_ref[...],
                            preferred_element_type=jnp.float32)

    @pl.when(pl.program_id(2) == pl.num_programs(2) - 1)
    def _():
        y = acc_ref[...] + bias_ref[...]
        if relu:
            y = jnp.maximum(y, 0.0)
        o_ref[...] = y.astype(o_ref.dtype)


def _round_up(x, m):
    return ((x + m - 1) // m) * m


def _pick_tile(dim, max_tile, align):
    """Return (padded_dim, tile): tile <= max_tile, tile % align == 0,
    padded_dim % tile == 0."""
    padded = _round_up(dim, align)
    tile = min(max_tile, padded)
    padded = _round_up(padded, tile)
    return padded, tile


def pack_dense(w_io, b=None, *, tn_max=512, tk_max=1024):
    """Pre-cast (bf16) and pre-pad a (in, out) weight + bias once, at init.
    Per-call only the activation gets padded/cast."""
    K, N = w_io.shape
    Kp, tk = _pick_tile(K, tk_max, 128)
    Np, tn = _pick_tile(N, tn_max, 128)
    w_pad = jnp.pad(w_io.astype(jnp.bfloat16), ((0, Kp - K), (0, Np - N)))
    if b is None:
        b_pad = jnp.zeros((1, Np), jnp.float32)
    else:
        b_pad = jnp.pad(b.astype(jnp.float32).reshape(1, N),
                        ((0, 0), (0, Np - N)))
    return dict(w=w_pad, b=b_pad, k=K, n=N, tk=tk, tn=tn)


def pallas_linear(x, dense, relu=False, out_dtype=jnp.float32, *,
                  tm_max=512, vmem_limit=40 * 1024 * 1024):
    """x: (..., in); dense: packed dict from pack_dense (weights (in,out), bf16,
    pre-padded).  bf16 MXU inputs, f32 accumulation, fused bias (+ReLU)."""
    lead = x.shape[:-1]
    K, N = dense["k"], dense["n"]
    a = x.reshape(-1, x.shape[-1])
    M = a.shape[0]
    Kp, Np = dense["w"].shape
    tk, tn = dense["tk"], dense["tn"]
    Mp, tm = _pick_tile(M, tm_max, 16)          # bf16 min tile is (16, 128)

    a_p = jnp.pad(a.astype(jnp.bfloat16), ((0, Mp - M), (0, Kp - K)))
    # TODO(synk): keep activations padded/bf16 between consecutive linears to
    # avoid the slice + re-pad HBM passes (the glue ops dominate at small E).

    grid = (Mp // tm, Np // tn, Kp // tk)
    kernel = functools.partial(_matmul_kernel, relu=relu)
    out = pl.pallas_call(
        kernel,
        out_shape=jax.ShapeDtypeStruct((Mp, Np), out_dtype),
        grid=grid,
        in_specs=[
            pl.BlockSpec((tm, tk), lambda i, j, k: (i, k)),
            pl.BlockSpec((tk, tn), lambda i, j, k: (k, j)),
            pl.BlockSpec((1, tn), lambda i, j, k: (0, j)),
        ],
        out_specs=pl.BlockSpec((tm, tn), lambda i, j, k: (i, j)),
        scratch_shapes=[pltpu.VMEM((tm, tn), jnp.float32)],
        compiler_params=pltpu.CompilerParams(
            dimension_semantics=("parallel", "parallel", "arbitrary"),
            vmem_limit_bytes=vmem_limit),
    )(a_p, dense["w"], dense["b"])
    return out[:M, :N].reshape(*lead, N)


# ---------------------------------------------------------------------------
# Transformer encoder (post-norm, matches torch.nn.TransformerEncoderLayer with
# dropout = 0).  LayerNorm / softmax / head reshapes are plain-JAX glue; all
# dense projections use the tiled Pallas matmul; attention matmuls use the
# native bf16 MXU path with f32 accumulation.
# ---------------------------------------------------------------------------
def layer_norm(x, g, b, eps=1e-5):
    x = x.astype(jnp.float32)
    mu = jnp.mean(x, axis=-1, keepdims=True)
    var = jnp.mean((x - mu) ** 2, axis=-1, keepdims=True)
    return (x - mu) * jax.lax.rsqrt(var + eps) * g + b


def multi_head_attention(x, mask, p, num_heads):
    B, S, E = x.shape
    dh = E // num_heads
    qkv = pallas_linear(x, p["in_proj"])            # (B, S, 3E)
    q, k, v = jnp.split(qkv, 3, axis=-1)

    def heads(t):
        return t.reshape(B, S, num_heads, dh).transpose(0, 2, 1, 3)  # (B,H,S,dh)

    # fold 1/sqrt(dh) into q (removes a VPU pass over the S^2 score array)
    q = heads(q) * (1.0 / jnp.sqrt(jnp.float32(dh)))
    k, v = heads(k), heads(v)

    scores = jnp.einsum("bhqd,bhkd->bhqk",
                        q.astype(jnp.bfloat16), k.astype(jnp.bfloat16),
                        preferred_element_type=jnp.float32)
    # key-padding mask: large finite negative avoids NaN if a row is fully padded
    scores = jnp.where(mask[:, None, None, :] > 0, scores, jnp.float32(-1e30))
    attn = jax.nn.softmax(scores, axis=-1)
    ctx = jnp.einsum("bhqk,bhkd->bhqd",
                     attn.astype(jnp.bfloat16), v.astype(jnp.bfloat16),
                     preferred_element_type=jnp.float32)
    ctx = ctx.transpose(0, 2, 1, 3).reshape(B, S, E)
    return pallas_linear(ctx, p["out_proj"])


def transformer_encoder(x, mask, layers, num_heads):
    for p in layers:
        a = multi_head_attention(x, mask, p, num_heads)
        x = layer_norm(x + a, p["ln1_g"], p["ln1_b"])
        # FF hidden only feeds another matmul -> emit bf16 from the epilogue
        h = pallas_linear(x, p["lin1"], relu=True, out_dtype=jnp.bfloat16)
        f = pallas_linear(h, p["lin2"])
        x = layer_norm(x + f, p["ln2_g"], p["ln2_b"])
    return x


# ---------------------------------------------------------------------------
# Pallas kernel 2: TK interaction scoring (cosine -> Gaussian kernels ->
# masked log / mean pooling -> dense heads -> score).  BB batch items per grid
# step, lane-dense (1, 1, BB) output block.
#
# Scalar parameters are pre-folded into a (5, K) SMEM table:
#   row 0: a_k = -1/(2*sigma_k^2)
#   row 1: b_k = -2*a_k*mu_k
#   row 2: c_k = a_k*mu_k^2          so  a*x^2 + b*x + c == -(x-mu)^2/(2 sigma^2)
#   row 3: wlog_k  = comb_w[0] * nn_scaler * dense_w[k]
#   row 4: wmean_k = comb_w[1] * nn_scaler * dense_mean_w[k]
# ---------------------------------------------------------------------------
def _tk_score_kernel(scal_ref, q_ref, dt_ref, qm_ref, dm_ref, out_ref,
                     *, n_kernels, bb):
    lane = jax.lax.broadcasted_iota(jnp.int32, (1, bb), 1)
    out = jnp.zeros((1, bb), jnp.float32)

    for b in range(bb):                     # static unroll over in-block items
        q = q_ref[b]                        # (Q, E)
        dt = dt_ref[b]                      # (E, D)  (pre-transposed in HBM)
        qm = qm_ref[b]                      # (Q, 1)
        dm = dm_ref[b]                      # (1, D)

        # CosineMatrixAttention: normalize then contract E on the MXU.
        qn = q * jax.lax.rsqrt(jnp.sum(q * q, axis=-1, keepdims=True) + 1e-26)
        dn = dt * jax.lax.rsqrt(jnp.sum(dt * dt, axis=0, keepdims=True) + 1e-26)
        cos = jnp.dot(qn, dn, preferred_element_type=jnp.float32)   # (Q, D)

        mask2d = qm * dm                    # == bmm(q_mask, d_mask^T)
        cos_m = cos * mask2d
        cos2 = cos_m * cos_m                # hoisted out of the K loop
        inv_dl = 1.0 / (jnp.sum(dm) + 1.0)

        # TODO(synk): at production Q/D, tile the D axis (inner loop over
        # 128-256 wide chunks) so cos_m/cos2/mask2d aren't all live across the
        # unrolled K loop; optionally bf16 exp on v6e/v7x (argument stays f32).
        acc = jnp.float32(0.0)
        for k in range(n_kernels):          # static unroll over soft-TF kernels
            a_k = scal_ref[0, k]
            b_k = scal_ref[1, k]
            c_k = scal_ref[2, k]
            wl_k = scal_ref[3, k]
            wm_k = scal_ref[4, k]
            rk = jnp.exp(a_k * cos2 + b_k * cos_m + c_k) * mask2d     # (Q, D)
            per_q = jnp.sum(rk, axis=-1, keepdims=True)               # (Q, 1) XLU
            pk = jnp.sum(jnp.log2(jnp.maximum(per_q, 1e-10)) * qm)
            pkm = jnp.sum(per_q * qm) * inv_dl
            acc = acc + wl_k * pk + wm_k * pkm

        out = out + jnp.where(lane == b, acc, jnp.float32(0.0))

    out_ref[...] = out.reshape(1, 1, bb)


def tk_score(q_mix, d_mix, q_mask, d_mask, mu, sigma, dense_w, dense_mean_w,
             comb_w, nn_scaler):
    B, Q, E = q_mix.shape
    _, D, _ = d_mix.shape
    K = mu.reshape(-1).shape[0]

    mu1 = mu.reshape(-1).astype(jnp.float32)
    sig1 = sigma.reshape(-1).astype(jnp.float32)
    dw1 = dense_w.reshape(-1).astype(jnp.float32)
    dmw1 = dense_mean_w.reshape(-1).astype(jnp.float32)
    cw1 = comb_w.reshape(-1).astype(jnp.float32)
    scaler = nn_scaler.reshape(()).astype(jnp.float32)

    a_k = -1.0 / (2.0 * sig1 * sig1)
    b_k = -2.0 * a_k * mu1
    c_k = a_k * mu1 * mu1
    wlog = cw1[0] * scaler * dw1
    wmean = cw1[1] * scaler * dmw1
    scal_tab = jnp.stack([a_k, b_k, c_k, wlog, wmean], axis=0)   # (5, K) -> SMEM

    # Block several batch items per grid step; pad batch to a multiple of BB.
    BB = 8 if B >= 8 else B
    Bp = _round_up(B, BB)
    pad_b = Bp - B

    q_p = jnp.pad(q_mix.astype(jnp.float32), ((0, pad_b), (0, 0), (0, 0)))
    d_t = jnp.transpose(d_mix.astype(jnp.float32), (0, 2, 1))   # (B, E, D)
    d_tp = jnp.pad(d_t, ((0, pad_b), (0, 0), (0, 0)))
    qm3 = jnp.pad(q_mask.astype(jnp.float32), ((0, pad_b), (0, 0)))[:, :, None]
    dm3 = jnp.pad(d_mask.astype(jnp.float32), ((0, pad_b), (0, 0)))[:, None, :]

    kernel = functools.partial(_tk_score_kernel, n_kernels=K, bb=BB)
    out = pl.pallas_call(
        kernel,
        out_shape=jax.ShapeDtypeStruct((Bp // BB, 1, BB), jnp.float32),
        grid=(Bp // BB,),
        in_specs=[
            pl.BlockSpec(memory_space=pltpu.MemorySpace.SMEM),   # (5, K) scalars
            pl.BlockSpec((BB, Q, E), lambda b: (b, 0, 0)),
            pl.BlockSpec((BB, E, D), lambda b: (b, 0, 0)),
            pl.BlockSpec((BB, Q, 1), lambda b: (b, 0, 0)),
            pl.BlockSpec((BB, 1, D), lambda b: (b, 0, 0)),
        ],
        out_specs=pl.BlockSpec((1, 1, BB), lambda b: (b, 0, 0)),
        compiler_params=pltpu.CompilerParams(
            dimension_semantics=("parallel",),      # batch blocks independent
            vmem_limit_bytes=32 * 1024 * 1024),
    )(scal_tab, q_p, d_tp, qm3, dm3)
    return out.reshape(-1)[:B]


# ---------------------------------------------------------------------------
# Full TK_v1 forward
# ---------------------------------------------------------------------------
def mixed_embeddings(params, emb, mask):
    emb_m = emb * mask[..., None]
    ctx = transformer_encoder(emb_m, mask, params["layers"], params["num_heads"])
    mixer = params["mixer"]
    return (mixer * emb_m + (1.0 - mixer) * ctx) * mask[..., None]


def tk_v1_forward(params, q_emb, d_emb, q_mask, d_mask):
    q_mix = mixed_embeddings(params, q_emb, q_mask)
    d_mix = mixed_embeddings(params, d_emb, d_mask)
    return tk_score(q_mix, d_mix, q_mask, d_mask,
                    params["mu"], params["sigma"],
                    params["dense_w"], params["dense_mean_w"],
                    params["comb_w"], params["nn_scaler"])


# pure-JAX reference for the scoring part (correctness check)
def tk_score_ref(q_mix, d_mix, q_mask, d_mask, mu, sigma, dw, dmw, cw, scaler):
    qn = q_mix / (jnp.linalg.norm(q_mix, axis=-1, keepdims=True) + 1e-13)
    dn = d_mix / (jnp.linalg.norm(d_mix, axis=-1, keepdims=True) + 1e-13)
    cos = jnp.einsum("bqe,bde->bqd", qn, dn, precision=jax.lax.Precision.HIGHEST)
    m2 = q_mask[:, :, None] * d_mask[:, None, :]
    cos_m = cos * m2
    mu4 = mu.reshape(1, 1, 1, -1)
    sig4 = sigma.reshape(1, 1, 1, -1)
    rk = jnp.exp(-((cos_m[..., None] - mu4) ** 2) / (2.0 * sig4 ** 2)) * m2[..., None]
    doc_len = jnp.sum(d_mask, axis=1)
    pkq = jnp.sum(rk, axis=2)                                   # (B, Q, K)
    per_kernel = jnp.sum(jnp.log2(jnp.maximum(pkq, 1e-10)) * scaler
                         * q_mask[..., None], axis=1)
    pkq_mean = pkq / (doc_len.reshape(-1, 1, 1) + 1.0)
    per_kernel_mean = jnp.sum(pkq_mean * scaler * q_mask[..., None], axis=1)
    dense_out = per_kernel @ dw.reshape(-1, 1)
    dense_mean_out = per_kernel_mean @ dmw.reshape(-1, 1)
    comb = jnp.concatenate([dense_out, dense_mean_out], axis=1) @ cw.reshape(-1, 1)
    return comb[:, 0]


# ---------------------------------------------------------------------------
# Deterministic parameter initialization (synthetic, shapes follow __init__).
# Dense weights stored as packed (pre-transposed (in,out), bf16, pre-padded).
# ---------------------------------------------------------------------------
def init_params(key, emb, ff, n_layers, n_heads, mu, sigma):
    k = key

    def nxt():
        nonlocal k
        k, sub = jax.random.split(k)
        return sub

    def rand_dense(in_dim, out_dim):
        w = jax.random.uniform(nxt(), (in_dim, out_dim), jnp.float32, -0.1, 0.1)
        b = jnp.zeros((out_dim,), jnp.float32)
        return pack_dense(w, b)

    layers = []
    for _ in range(n_layers):
        layers.append(dict(
            in_proj=rand_dense(emb, 3 * emb),
            out_proj=rand_dense(emb, emb),
            lin1=rand_dense(emb, ff),
            lin2=rand_dense(ff, emb),
            ln1_g=jnp.ones((emb,), jnp.float32), ln1_b=jnp.zeros((emb,), jnp.float32),
            ln2_g=jnp.ones((emb,), jnp.float32), ln2_b=jnp.zeros((emb,), jnp.float32),
        ))
    n_kernels = mu.shape[0]
    return dict(
        layers=layers,
        num_heads=n_heads,
        mu=mu.astype(jnp.float32),
        sigma=sigma.astype(jnp.float32),
        nn_scaler=jnp.full((1,), 0.01, jnp.float32),
        mixer=jnp.float32(0.5),
        dense_w=jax.random.uniform(nxt(), (1, n_kernels), jnp.float32, -0.014, 0.014),
        dense_mean_w=jax.random.uniform(nxt(), (1, n_kernels), jnp.float32, -0.014, 0.014),
        comb_w=jax.random.uniform(nxt(), (1, 2), jnp.float32,
                                  -1.0 / np.sqrt(2.0), 1.0 / np.sqrt(2.0)),
    )


if __name__ == "__main__":
    B, QL, DL, E = 2, 8, 16, 32
    HEADS, LAYERS, FF = 4, 2, 64
    mus = jnp.array([1.0, 0.9, 0.7, 0.5, 0.3, 0.1, -0.1, -0.3, -0.5, -0.7, -0.9],
                    jnp.float32)
    sigmas = jnp.full((11,), 0.1, jnp.float32)

    key = jax.random.PRNGKey(0)
    kq, kd, kp = jax.random.split(key, 3)
    q_emb = jax.random.normal(kq, (B, QL, E), jnp.float32)
    d_emb = jax.random.normal(kd, (B, DL, E), jnp.float32)
    q_lens = jnp.array([QL, 5])
    d_lens = jnp.array([DL, 11])
    q_mask = (jnp.arange(QL)[None, :] < q_lens[:, None]).astype(jnp.float32)
    d_mask = (jnp.arange(DL)[None, :] < d_lens[:, None]).astype(jnp.float32)

    params = init_params(kp, E, FF, LAYERS, HEADS, mus, sigmas)

    score = tk_v1_forward(params, q_emb, d_emb, q_mask, d_mask)
    score = jax.block_until_ready(score)

    # sanity check: Pallas scoring kernel vs pure-JAX reference (same q_mix/d_mix)
    q_mix = mixed_embeddings(params, q_emb, q_mask)
    d_mix = mixed_embeddings(params, d_emb, d_mask)
    ref = tk_score_ref(q_mix, d_mix, q_mask, d_mask, params["mu"], params["sigma"],
                       params["dense_w"], params["dense_mean_w"], params["comb_w"],
                       params["nn_scaler"])
    np.testing.assert_allclose(np.asarray(score), np.asarray(ref),
                               rtol=2e-3, atol=2e-4)

    print("KERNEL_OK")
</pallas_src>

<mosaic_0001>
module attributes {stable_mosaic.version = 11 : i64} {
  func.func @_matmul_kernel(%arg0: i32, %arg1: i32, %arg2: i32, %arg3: memref<16x128xbf16, #tpu.memory_space<vmem>>, %arg4: memref<128x128xbf16, #tpu.memory_space<vmem>>, %arg5: memref<1x128xf32, #tpu.memory_space<vmem>>, %arg6: memref<16x128xf32, #tpu.memory_space<vmem>>, %arg7: memref<16x128xf32, #tpu.memory_space<vmem>>) attributes {dimension_semantics = [#tpu.dimension_semantics<parallel>, #tpu.dimension_semantics<parallel>, #tpu.dimension_semantics<arbitrary>], iteration_bounds = array<i64: 1, 1, 1>, scalar_prefetch = 0 : i64, scratch_operands = 1 : i64, tpu.core_type = #tpu.core_type<tc>, window_params = [{transform_indices = @transform_0, window_bounds = array<i64: 16, 128>}, {transform_indices = @transform_1, window_bounds = array<i64: 128, 128>}, {transform_indices = @transform_2, window_bounds = array<i64: 1, 128>}, {transform_indices = @transform_3, window_bounds = array<i64: 16, 128>}]} {
    %c0_i32 = arith.constant 0 : i32
    %0 = arith.cmpi eq, %arg2, %c0_i32 : i32
    %1 = arith.extui %0 : i1 to i32
    %c0_i32_0 = arith.constant 0 : i32
    %2 = arith.cmpi ne, %1, %c0_i32_0 : i32
    scf.if %2 {
      %cst_10 = arith.constant 0.000000e+00 : f32
      %12 = vector.broadcast %cst_10 : f32 to vector<16x128xf32>
      %c0_11 = arith.constant 0 : index
      %c0_12 = arith.constant 0 : index
      %13 = vector.load %arg7[%c0_11, %c0_12] : memref<16x128xf32, #tpu.memory_space<vmem>>, vector<16x128xf32>
      tpu.vector_store %arg7[%c0_11, %c0_12], %12 {strides = array<i32>} : memref<16x128xf32, #tpu.memory_space<vmem>>, vector<16x128xf32>,
    } else {
    }
    %c0 = arith.constant 0 : index
    %c0_1 = arith.constant 0 : index
    %3 = vector.load %arg7[%c0, %c0_1] : memref<16x128xf32, #tpu.memory_space<vmem>>, vector<16x128xf32>
    %c0_2 = arith.constant 0 : index
    %c0_3 = arith.constant 0 : index
    %4 = vector.load %arg3[%c0_2, %c0_3] : memref<16x128xbf16, #tpu.memory_space<vmem>>, vector<16x128xbf16>
    %c0_4 = arith.constant 0 : index
    %c0_5 = arith.constant 0 : index
    %5 = vector.load %arg4[%c0_4, %c0_5] : memref<128x128xbf16, #tpu.memory_space<vmem>>, vector<128x128xbf16>
    %cst = arith.constant dense<0.000000e+00> : vector<16x128xf32>
    %6 = tpu.matmul %4, %5, %cst {dimension_numbers = #tpu.dot_dimension_numbers<[1], [0], [0], [1], [0, 0, 1, 1], [], []>} : vector<16x128xbf16>, vector<128x128xbf16>, vector<16x128xf32> -> vector<16x128xf32>
    %7 = arith.addf %3, %6 : vector<16x128xf32>
    %c0_6 = arith.constant 0 : index
    %c0_7 = arith.constant 0 : index
    %8 = vector.load %arg7[%c0_6, %c0_7] : memref<16x128xf32, #tpu.memory_space<vmem>>, vector<16x128xf32>
    tpu.vector_store %arg7[%c0_6, %c0_7], %7 {strides = array<i32>} : memref<16x128xf32, #tpu.memory_space<vmem>>, vector<16x128xf32>,
    %c0_i32_8 = arith.constant 0 : i32
    %9 = arith.cmpi eq, %arg2, %c0_i32_8 : i32
    %10 = arith.extui %9 : i1 to i32
    %c0_i32_9 = arith.constant 0 : i32
    %11 = arith.cmpi ne, %10, %c0_i32_9 : i32
    scf.if %11 {
      %c0_10 = arith.constant 0 : index
      %c0_11 = arith.constant 0 : index
      %12 = vector.load %arg7[%c0_10, %c0_11] : memref<16x128xf32, #tpu.memory_space<vmem>>, vector<16x128xf32>
      %c0_12 = arith.constant 0 : index
      %c0_13 = arith.constant 0 : index
      %13 = vector.load %arg5[%c0_12, %c0_13] : memref<1x128xf32, #tpu.memory_space<vmem>>, vector<1x128xf32>
      %14 = vector.broadcast %13 : vector<1x128xf32> to vector<16x128xf32>
      %15 = arith.addf %12, %14 : vector<16x128xf32>
      %c0_14 = arith.constant 0 : index
      %c0_15 = arith.constant 0 : index
      %16 = vector.load %arg6[%c0_14, %c0_15] : memref<16x128xf32, #tpu.memory_space<vmem>>, vector<16x128xf32>
      tpu.vector_store %arg6[%c0_14, %c0_15], %15 {strides = array<i32>} : memref<16x128xf32, #tpu.memory_space<vmem>>, vector<16x128xf32>,
    } else {
    }
    return
  }
  func.func @transform_0(%arg0: i32, %arg1: i32, %arg2: i32) -> (i32, i32) {
    %c0_i32 = arith.constant 0 : i32
    return %arg0, %arg2 : i32, i32
  }
  func.func @transform_1(%arg0: i32, %arg1: i32, %arg2: i32) -> (i32, i32) {
    %c0_i32 = arith.constant 0 : i32
    return %arg2, %arg1 : i32, i32
  }
  func.func @transform_2(%arg0: i32, %arg1: i32, %arg2: i32) -> (i32, i32) {
    %c0_i32 = arith.constant 0 : i32
    %c0_i32_0 = arith.constant 0 : i32
    return %c0_i32, %arg1 : i32, i32
  }
  func.func @transform_3(%arg0: i32, %arg1: i32, %arg2: i32) -> (i32, i32) {
    %c0_i32 = arith.constant 0 : i32
    return %arg0, %arg1 : i32, i32
  }
}

</mosaic_0001>

<bundles_post_ra>
// kernel: tpu_custom_call.1
= control target key start
LH: loop header
LB: loop body
LE: loop exit
PB: predicated region body
PF: predicated region fallthrough
CT: control target
= control target key end

     0   :  { %8 = vsyncpa [#allocation4], 0  ;;  %s400_s0 = inlined_call_operand.hbm [shape: bf16[16,128], index: 0, kind: input, shape index: {}]   ;;  %s401_s1 = inlined_call_operand.hbm [shape: bf16[128,128], index: 1, kind: input, shape index: {}]   ;;  %s402_s2 = inlined_call_operand.vmem [shape: f32[1,128], index: 2, kind: input, shape index: {}]   ;;  %s403_s3 = inlined_call_operand.hbm [shape: f32[16,128], index: 3, kind: output, shape index: {}]  }
   0x1   :  { %9 = vsyncpa [#allocation7], 0 }
   0x2   :  { %10 = vsyncpa [#allocation5], 0  ;;  %s332_s12 = smov [#allocation3]   ;;  %s260_s16 = scalar_lea.hbm %s400_s0, 128 }
   0x3   :  { %s16_s13 = sshll.u32 %s332_s12, 4  ;;  %p261_p0 = scmp.ne.s32.totalorder %s400_s0, %s260_s16  ;;  %s17_s13 = int_to_ptr.vmem [resolvable:$true] %s16_s13 }
   0x4   :  { %p264_p1 = scmp.lt.u32.totalorder %s260_s16, %s400_s0 }
   0x6   :  { %p266_p2 = pnand %p264_p1, %p261_p0 }
   0x8   :  { %269 = shalt.err (!%p266_p2)
}
   0x9   :  { %s270_s21 = scalar_lea.vmem %s17_s13, 128  ;;  %p275_p4 = scmp.lt.s32.totalorder %s17_s13, %s17_s13 }
   0xa   :  { %p271_p3 = scmp.ne.s32.totalorder %s17_s13, %s270_s21  ;;  %p276_p5 = scmp.lt.s32.totalorder %s270_s21, %s270_s21 }
   0xc   :  { %p277_p6 = por %p276_p5, %p275_p4 }
   0xe   :  { %p278_p7 = pnand %p277_p6, %p271_p3 }
  0x10   :  { %281 = shalt.err (!%p278_p7)
}
  0x11   :  { %s333_s22 = smov 64   ;;  %s334_s23 = smov 4  }
  0x12   :  { %22 = dma.hbm_to_vmem [thread:$0]  %s400_s0, 128, %s17_s13, [#allocation4], %s333_s22, %s333_s22, %s334_s23  }
  0x13   :  { %s335_s26 = smov [#allocation6]   ;;  %s282_s30 = scalar_lea.hbm %s401_s1, 1024 }
  0x14   :  { %s28_s27 = sshll.u32 %s335_s26, 4  ;;  %p283_p8 = scmp.ne.s32.totalorder %s401_s1, %s282_s30  ;;  %s29_s27 = int_to_ptr.vmem [resolvable:$true] %s28_s27 }
  0x15   :  { %p286_p9 = scmp.lt.u32.totalorder %s282_s30, %s401_s1 }
  0x17   :  { %p288_p10 = pnand %p286_p9, %p283_p8 }
  0x19   :  { %291 = shalt.err (!%p288_p10)
}
  0x1a   :  { %s292_s8 = scalar_lea.vmem %s29_s27, 1024  ;;  %p297_p12 = scmp.lt.s32.totalorder %s29_s27, %s29_s27 }
  0x1b   :  { %p293_p11 = scmp.ne.s32.totalorder %s29_s27, %s292_s8  ;;  %p298_p13 = scmp.lt.s32.totalorder %s292_s8, %s292_s8 }
  0x1d   :  { %p299_p0 = por %p298_p13, %p297_p12 }
  0x1f   :  { %p300_p1 = pnand %p299_p0, %p293_p11 }
  0x21   :  { %303 = shalt.err (!%p300_p1)
}
  0x22   :  { %34 = dma.hbm_to_vmem [thread:$0]  %s401_s1, 1024, %s29_s27, [#allocation7], %s333_s22, %s333_s22, %s334_s23  }
  0x23   :  { %326 = dma.done.wait [#allocation4], 128  }
  0x24   :  { %327 = vsyncadd [#allocation4], 4294967168 }
  0x25   :  { %328 = dma.done.wait [#allocation7], 1024  }
  0x26   :  { %329 = vsyncadd [#allocation7], 4294966272  ;;  %v336_v0 = vmov 0.0   ;;  %vm337_vm0 = vmmov 0   ;;  %v251_v1 = vld [vmem:[#allocation6] sm:$0xff]   ;;  %v252_v2 = vld [vmem:[#allocation6 + $0x8] sm:$0xff]  }
  0x27   :  { %222 = vmatprep.subr.bf16.mxu0 %v336_v0  ;;  %238 = vmatprep.mubr.msk.bf16.mxu0 %vm337_vm0, %v336_v0  ;;  %v253_v3 = vld [vmem:[#allocation6 + $0x10] sm:$0xff]   ;;  %v254_v4 = vld [vmem:[#allocation6 + $0x18] sm:$0xff]   ;;  %v255_v5 = vld [vmem:[#allocation6 + $0x20] sm:$0xff]   ;;  %s338_s11 = smov [#allocation8]  }
  0x28   :  { %223 = vmatpush3.bf16.msra.mxu0 %v251_v1  ;;  %v256_v6 = vld [vmem:[#allocation6 + $0x28] sm:$0xff]   ;;  %v257_v7 = vld [vmem:[#allocation6 + $0x30] sm:$0xff]   ;;  %v258_v8 = vld [vmem:[#allocation6 + $0x38] sm:$0xff]   ;;  %s190_s12 = sshll.u32 %s338_s11, 4  ;;  %s191_s12 = int_to_ptr.vmem [resolvable:$true] %s190_s12 }
  0x29   :  { %224 = vmatprep.subr.bf16.mxu0 %v336_v0  ;;  %v259_v9 = vld [vmem:[#allocation3] sm:$0xff]   ;;  %s304_s13 = scalar_lea.vmem %s191_s12, 256  ;;  %p309_p3 = scmp.lt.s32.totalorder %s191_s12, %s191_s12 }
  0x2a   :  { %v212_v10 = vld [vmem:[%s402_s2] ss:$0 sm:$0xff]  ;;  %p305_p2 = scmp.ne.s32.totalorder %s191_s12, %s304_s13  ;;  %p310_p4 = scmp.lt.s32.totalorder %s304_s13, %s304_s13 }
  0x2c   :  { %225 = vmatpush3.bf16.msra.mxu0 %v252_v2  ;;  %p311_p5 = por %p310_p4, %p309_p3 }
  0x2d   :  { %226 = vmatprep.subr.bf16.mxu0 %v336_v0 }
  0x2e   :  { %p312_p6 = pnand %p311_p5, %p305_p2 }
  0x30   :  { %227 = vmatpush3.bf16.msra.mxu0 %v253_v3 }
  0x31   :  { %228 = vmatprep.subr.bf16.mxu0 %v336_v0 }
  0x34   :  { %229 = vmatpush3.bf16.msra.mxu0 %v254_v4 }
  0x35   :  { %230 = vmatprep.subr.bf16.mxu0 %v336_v0 }
  0x38   :  { %231 = vmatpush3.bf16.msra.mxu0 %v255_v5 }
  0x39   :  { %232 = vmatprep.subr.bf16.mxu0 %v336_v0 }
  0x3c   :  { %233 = vmatpush3.bf16.msra.mxu0 %v256_v6 }
  0x3d   :  { %234 = vmatprep.subr.bf16.mxu0 %v336_v0 }
  0x40   :  { %235 = vmatpush3.bf16.msra.mxu0 %v257_v7 }
  0x41   :  { %236 = vmatprep.subr.bf16.mxu0 %v336_v0 }
  0x44   :  { %237 = vmatpush3.bf16.msra.mxu0 %v258_v8 }
  0x47   :  { %239 = vmatmul.mubr.bf16.vlgmr.msra.gmra.mrb[0].mxu0 %v259_v9 }
 0x11a   :  { %v158_v11 = vpop.f32.mrb[0].mxu0 }
 0x11b   :  { %v181_v12 = vadd.f32 %v212_v10, %v158_v11  ;;  %v240_v13 = vpop.f32.mrb[1].mxu0 }
 0x11c   :  { %v161_v14 = vpop.f32.mrb[2].mxu0 }
 0x11d   :  { %183 = vst [vmem:[#allocation8] sm:$0xff] %v181_v12  ;;  %v182_v15 = vadd.f32 %v212_v10, %v161_v14  ;;  %v241_v16 = vpop.f32.mrb[3].mxu0 }
 0x11f   :  { %184 = vst [vmem:[#allocation8 + $0x8] sm:$0xff] %v182_v15 }
 0x120   :  { %315 = shalt.err (!%p312_p6)
}
 0x121   :  { %s316_s15 = scalar_lea.hbm %s403_s3, 256 }
 0x122   :  { %p317_p7 = scmp.ne.s32.totalorder %s403_s3, %s316_s15  ;;  %p320_p8 = scmp.lt.u32.totalorder %s316_s15, %s403_s3 }
 0x124   :  { %p322_p9 = pnand %p320_p8, %p317_p7 }
 0x126   :  { %325 = shalt.err (!%p322_p9)
}
 0x127   :  { %s339_s20 = smov 128   ;;  %s340_s21 = smov 8  }
 0x128   :  { %196 = dma.vmem_to_hbm [thread:$0]  %s191_s12, 256, %s403_s3, [#allocation5], %s339_s20, %s339_s20, %s340_s21  }
 0x129   :  { %330 = dma.done.wait [#allocation5], 256  }
 0x12a   :  { %331 = vsyncadd [#allocation5], 4294967040 }
 0x12b   :  { %200 = vsyncpa [#allocation4], 1 }
 0x12c   :  { %201 = vsyncpa [#allocation7], 1 }
 0x12d   :  { %202 = vsyncpa [#allocation5], 1 }

</bundles_post_ra>
